<compile_context>
chip_gen: v7x
topology: tpu7x:2x2x1
jax: 0.10.0
libtpu: 0.0.40
codegen_flags: <defaults>
</compile_context>

<pallas_src>
import functools

import jax
import jax.numpy as jnp
from jax.experimental import pallas as pl
from jax.experimental.pallas import tpu as pltpu


def _round_up(x, m):
    return ((x + m - 1) // m) * m


def _head_kernel(x_ref, w_ref, b_ref, out_ref):
    # x_ref: [TB, D]   w_ref: [D, Cp] (VMEM-resident)   b_ref: [1, Cp]
    acc = jnp.dot(x_ref[...], w_ref[...], preferred_element_type=jnp.float32)
    out_ref[...] = (acc + b_ref[...].astype(jnp.float32)).astype(out_ref.dtype)


def _head_dropout_kernel(x_ref, m_ref, w_ref, b_ref, out_ref, *, inv_keep):
    # Dropout: zero dropped features (mask is already in x's dtype); the
    # 1/(1-p) rescale is applied once on the small [TB, Cp] accumulator.
    x = x_ref[...] * m_ref[...]
    acc = jnp.dot(x, w_ref[...], preferred_element_type=jnp.float32)
    out_ref[...] = (acc * inv_keep + b_ref[...].astype(jnp.float32)
                    ).astype(out_ref.dtype)


def prepare_head_params(weight, bias):
    """One-time prep (call at init): transpose + pad classes to a multiple of 128.

    weight: [C, D] (nn.Linear layout), bias: [C]  ->  w_pad: [D, Cp], b_pad: [1, Cp]
    """
    C, D = weight.shape
    Cp = _round_up(C, 128)
    w_pad = jnp.zeros((D, Cp), weight.dtype).at[:, :C].set(weight.T)
    b_pad = jnp.zeros((1, Cp), bias.dtype).at[0, :C].set(bias)
    return w_pad, b_pad


@functools.partial(
    jax.jit, static_argnames=("num_classes", "p_drop", "train", "block_b"))
def mlp_classifier_forward(embs, w_pad, b_pad, key, *, num_classes,
                           p_drop=0.1, train=False, block_b=256):
    """Classifier head: dropout(embs) @ W.T + b  ->  [B, num_classes].

    embs:  [B, D]    (stand-in for model.bert_features output)
    w_pad: [D, Cp]   (from prepare_head_params)
    b_pad: [1, Cp]
    key:   jax PRNG key (only used when train=True)
    """
    assert 0.0 <= p_drop < 1.0, "p_drop must be in [0, 1)"
    B, D = embs.shape
    Cp = w_pad.shape[1]

    # Sublane-aligned batch tile: 8 rows for 4-byte, 16 for 2-byte, 32 for 1-byte.
    sub = {4: 8, 2: 16, 1: 32}.get(jnp.dtype(embs.dtype).itemsize, 8)
    TB = min(_round_up(B, sub), _round_up(block_b, sub))
    grid = (pl.cdiv(B, TB),)

    out_shape = jax.ShapeDtypeStruct((B, Cp), jnp.float32)
    x_spec = pl.BlockSpec((TB, D), lambda i: (i, 0))
    w_spec = pl.BlockSpec((D, Cp), lambda i: (0, 0))   # constant -> resident in VMEM
    b_spec = pl.BlockSpec((1, Cp), lambda i: (0, 0))
    o_spec = pl.BlockSpec((TB, Cp), lambda i: (i, 0))
    cparams = pltpu.CompilerParams(dimension_semantics=("parallel",))

    if train and p_drop > 0.0:
        keep = jax.random.bernoulli(key, 1.0 - p_drop, embs.shape).astype(embs.dtype)
        kernel = functools.partial(_head_dropout_kernel,
                                   inv_keep=float(1.0 / (1.0 - p_drop)))
        out = pl.pallas_call(
            kernel,
            out_shape=out_shape,
            grid=grid,
            in_specs=[x_spec, x_spec, w_spec, b_spec],
            out_specs=o_spec,
            compiler_params=cparams,
        )(embs, keep, w_pad, b_pad)
    else:
        out = pl.pallas_call(
            _head_kernel,
            out_shape=out_shape,
            grid=grid,
            in_specs=[x_spec, w_spec, b_spec],
            out_specs=o_spec,
            compiler_params=cparams,
        )(embs, w_pad, b_pad)

    # Slice away the padded class lanes.
    return out[:, :num_classes]


if __name__ == "__main__":
    # Small shapes consistent with the module: 16 (hypothesis, premise) pairs,
    # model.dim = 256, num_classes = 4.
    B, D, C = 16, 256, 4
    p = 0.1

    key = jax.random.PRNGKey(0)
    k_emb, k_w, k_b, k_drop = jax.random.split(key, 4)

    embs = jax.random.normal(k_emb, (B, D), dtype=jnp.float32)
    weight = jax.random.normal(k_w, (C, D), dtype=jnp.float32) * 0.1
    bias = jax.random.normal(k_b, (C,), dtype=jnp.float32) * 0.1

    # One-time parameter prep (kept out of the per-call path).
    w_pad, b_pad = prepare_head_params(weight, bias)

    # --- Eval mode (dropout == identity): exact-structure reference check. ---
    out = mlp_classifier_forward(embs, w_pad, b_pad, k_drop,
                                 num_classes=C, p_drop=p, train=False)
    out = jax.block_until_ready(out)
    ref = jnp.dot(embs, weight.T, precision=jax.lax.Precision.HIGHEST) + bias
    assert out.shape == (B, C), out.shape
    assert jnp.allclose(out, ref, atol=2e-2, rtol=2e-2), (
        float(jnp.max(jnp.abs(out - ref))))

    # --- Train mode: dropout mask applied in-kernel (mask-multiply). ---
    out_tr = mlp_classifier_forward(embs, w_pad, b_pad, k_drop,
                                    num_classes=C, p_drop=p, train=True)
    out_tr = jax.block_until_ready(out_tr)
    keep = jax.random.bernoulli(k_drop, 1.0 - p, embs.shape).astype(embs.dtype)
    ref_tr = jnp.dot(embs * keep, weight.T,
                     precision=jax.lax.Precision.HIGHEST) / (1.0 - p) + bias
    assert out_tr.shape == (B, C), out_tr.shape
    assert bool(jnp.all(jnp.isfinite(out_tr)))
    assert jnp.allclose(out_tr, ref_tr, atol=2e-2, rtol=2e-2), (
        float(jnp.max(jnp.abs(out_tr - ref_tr))))

    print("KERNEL_OK")
</pallas_src>

<mosaic_0001>
module attributes {stable_mosaic.version = 11 : i64} {
  func.func @_head_kernel(%arg0: i32, %arg1: memref<16x256xf32, #tpu.memory_space<vmem>>, %arg2: memref<256x128xf32, #tpu.memory_space<vmem>>, %arg3: memref<1x128xf32, #tpu.memory_space<vmem>>, %arg4: memref<16x128xf32, #tpu.memory_space<vmem>>) attributes {dimension_semantics = [#tpu.dimension_semantics<parallel>], iteration_bounds = array<i64: 1>, scalar_prefetch = 0 : i64, scratch_operands = 0 : i64, tpu.core_type = #tpu.core_type<tc>, window_params = [{transform_indices = @transform_0, window_bounds = array<i64: 16, 256>}, {pipeline_mode = #tpu.pipeline_mode<synchronous>, transform_indices = @transform_1, window_bounds = array<i64: 256, 128>}, {pipeline_mode = #tpu.pipeline_mode<synchronous>, transform_indices = @transform_2, window_bounds = array<i64: 1, 128>}, {transform_indices = @transform_3, window_bounds = array<i64: 16, 128>}]} {
    %c0 = arith.constant 0 : index
    %c0_0 = arith.constant 0 : index
    %0 = vector.load %arg1[%c0, %c0_0] : memref<16x256xf32, #tpu.memory_space<vmem>>, vector<16x256xf32>
    %c0_1 = arith.constant 0 : index
    %c0_2 = arith.constant 0 : index
    %1 = vector.load %arg2[%c0_1, %c0_2] : memref<256x128xf32, #tpu.memory_space<vmem>>, vector<256x128xf32>
    %cst = arith.constant dense<0.000000e+00> : vector<16x128xf32>
    %2 = tpu.matmul %0, %1, %cst {dimension_numbers = #tpu.dot_dimension_numbers<[1], [0], [0], [1], [0, 0, 1, 1], [], []>} : vector<16x256xf32>, vector<256x128xf32>, vector<16x128xf32> -> vector<16x128xf32>
    %c0_3 = arith.constant 0 : index
    %c0_4 = arith.constant 0 : index
    %3 = vector.load %arg3[%c0_3, %c0_4] : memref<1x128xf32, #tpu.memory_space<vmem>>, vector<1x128xf32>
    %4 = vector.broadcast %3 : vector<1x128xf32> to vector<16x128xf32>
    %5 = arith.addf %2, %4 : vector<16x128xf32>
    %c0_5 = arith.constant 0 : index
    %c0_6 = arith.constant 0 : index
    %6 = vector.load %arg4[%c0_5, %c0_6] : memref<16x128xf32, #tpu.memory_space<vmem>>, vector<16x128xf32>
    tpu.vector_store %arg4[%c0_5, %c0_6], %5 {strides = array<i32>} : memref<16x128xf32, #tpu.memory_space<vmem>>, vector<16x128xf32>,
    return
  }
  func.func @transform_0(%arg0: i32) -> (i32, i32) {
    %c0_i32 = arith.constant 0 : i32
    %c0_i32_0 = arith.constant 0 : i32
    return %arg0, %c0_i32 : i32, i32
  }
  func.func @transform_1(%arg0: i32) -> (i32, i32) {
    %c0_i32 = arith.constant 0 : i32
    %c0_i32_0 = arith.constant 0 : i32
    %c0_i32_1 = arith.constant 0 : i32
    return %c0_i32, %c0_i32_0 : i32, i32
  }
  func.func @transform_2(%arg0: i32) -> (i32, i32) {
    %c0_i32 = arith.constant 0 : i32
    %c0_i32_0 = arith.constant 0 : i32
    %c0_i32_1 = arith.constant 0 : i32
    return %c0_i32, %c0_i32_0 : i32, i32
  }
  func.func @transform_3(%arg0: i32) -> (i32, i32) {
    %c0_i32 = arith.constant 0 : i32
    %c0_i32_0 = arith.constant 0 : i32
    return %arg0, %c0_i32 : i32, i32
  }
}

</mosaic_0001>

<bundles_post_ra>
// kernel: mlp_classifier_forward.1
= control target key start
LH: loop header
LB: loop body
LE: loop exit
PB: predicated region body
PF: predicated region fallthrough
CT: control target
= control target key end

     0   :  { %8 = vsyncpa [#allocation3], 0  ;;  %s368_s0 = inlined_call_operand.hbm [shape: f32[16,256], index: 0, kind: input, shape index: {}]   ;;  %s369_s1 = inlined_call_operand.hbm [shape: f32[256,128], index: 1, kind: input, shape index: {}]   ;;  %s370_s2 = inlined_call_operand.vmem [shape: f32[1,128], index: 2, kind: input, shape index: {}]   ;;  %s371_s3 = inlined_call_operand.vmem [shape: f32[16,128], index: 3, kind: output, shape index: {}]  }
   0x1   :  { %9 = vsyncpa [#allocation5], 0  ;;  %s309_s12 = smov [#allocation2]   ;;  %s261_s16 = scalar_lea.hbm %s368_s0, 512 }
   0x2   :  { %s15_s13 = sshll.u32 %s309_s12, 4  ;;  %p262_p0 = scmp.ne.s32.totalorder %s368_s0, %s261_s16  ;;  %s16_s13 = int_to_ptr.vmem [resolvable:$true] %s15_s13 }
   0x3   :  { %p265_p1 = scmp.lt.u32.totalorder %s261_s16, %s368_s0 }
   0x5   :  { %p267_p2 = pnand %p265_p1, %p262_p0 }
   0x7   :  { %270 = shalt.err (!%p267_p2)
}
   0x8   :  { %s271_s21 = scalar_lea.vmem %s16_s13, 512  ;;  %p276_p4 = scmp.lt.s32.totalorder %s16_s13, %s16_s13 }
   0x9   :  { %p272_p3 = scmp.ne.s32.totalorder %s16_s13, %s271_s21  ;;  %p277_p5 = scmp.lt.s32.totalorder %s271_s21, %s271_s21 }
   0xb   :  { %p278_p6 = por %p277_p5, %p276_p4 }
   0xd   :  { %p279_p7 = pnand %p278_p6, %p272_p3 }
   0xf   :  { %282 = shalt.err (!%p279_p7)
}
  0x10   :  { %s310_s22 = smov 256   ;;  %s311_s23 = smov 16  }
  0x11   :  { %21 = dma.hbm_to_vmem [thread:$0]  %s368_s0, 512, %s16_s13, [#allocation3], %s310_s22, %s310_s22, %s311_s23  }
  0x12   :  { %s312_s26 = smov [#allocation4]   ;;  %s283_s30 = scalar_lea.hbm %s369_s1, 4096 }
  0x13   :  { %s27_s27 = sshll.u32 %s312_s26, 4  ;;  %p284_p8 = scmp.ne.s32.totalorder %s369_s1, %s283_s30  ;;  %s28_s27 = int_to_ptr.vmem [resolvable:$true] %s27_s27 }
  0x14   :  { %p287_p9 = scmp.lt.u32.totalorder %s283_s30, %s369_s1 }
  0x16   :  { %p289_p10 = pnand %p287_p9, %p284_p8 }
  0x18   :  { %292 = shalt.err (!%p289_p10)
}
  0x19   :  { %s293_s8 = scalar_lea.vmem %s28_s27, 4096  ;;  %p298_p12 = scmp.lt.s32.totalorder %s28_s27, %s28_s27 }
  0x1a   :  { %p294_p11 = scmp.ne.s32.totalorder %s28_s27, %s293_s8  ;;  %p299_p13 = scmp.lt.s32.totalorder %s293_s8, %s293_s8 }
  0x1c   :  { %p300_p0 = por %p299_p13, %p298_p12 }
  0x1e   :  { %p301_p1 = pnand %p300_p0, %p294_p11 }
  0x20   :  { %304 = shalt.err (!%p301_p1)
}
  0x21   :  { %s313_s0 = smov 128   ;;  %s314_s9 = smov 8  }
  0x22   :  { %33 = dma.hbm_to_vmem [thread:$0]  %s369_s1, 4096, %s28_s27, [#allocation5], %s313_s0, %s313_s0, %s314_s9  }
  0x23   :  { %305 = dma.done.wait [#allocation3], 512  }
  0x24   :  { %306 = vsyncadd [#allocation3], 4294966784 }
  0x25   :  { %307 = dma.done.wait [#allocation5], 4096  }
  0x26   :  { %308 = vsyncadd [#allocation5], 4294963200  ;;  %v62_v0 = vld [vmem:[#allocation4 + $0x80] sm:$0xff]  ;;  %v63_v1 = vld [vmem:[#allocation4 + $0x88] sm:$0xff] }
  0x27   :  { %v46_v2 = vld [vmem:[#allocation4] sm:$0xff]  ;;  %v207_v3 = vpack.c.bf16 %v63_v1, %v62_v0  ;;  %v47_v4 = vld [vmem:[#allocation4 + $0x8] sm:$0xff]  ;;  %v64_v5 = vld [vmem:[#allocation4 + $0x90] sm:$0xff] }
  0x28   :  { %v65_v6 = vld [vmem:[#allocation4 + $0x98] sm:$0xff]  ;;  %v209_v7 = vpack.c.bf16 %v47_v4, %v46_v2  ;;  %v48_v9 = vld [vmem:[#allocation4 + $0x10] sm:$0xff]  ;;  %v66_v11 = vld [vmem:[#allocation4 + $0xa0] sm:$0xff] }
  0x29   :  { %v211_v8 = vpack.c.bf16 %v65_v6, %v64_v5  ;;  %v49_v10 = vld [vmem:[#allocation4 + $0x18] sm:$0xff]  ;;  %208 = vmatprep.subr.bf16.mxu0 %v207_v3  ;;  %239 = vmatprep.subr.bf16.mxu1 %v207_v3  ;;  %v67_v12 = vld [vmem:[#allocation4 + $0xa8] sm:$0xff]  ;;  %v50_v15 = vld [vmem:[#allocation4 + $0x20] sm:$0xff] }
  0x2a   :  { %210 = vmatpush3.bf16.msra.mxu0 %v209_v7  ;;  %247 = vmatpush3.bf16.msra.mxu1 %v209_v7  ;;  %v213_v13 = vpack.c.bf16 %v49_v10, %v48_v9  ;;  %v215_v14 = vpack.c.bf16 %v67_v12, %v66_v11  ;;  %v51_v16 = vld [vmem:[#allocation4 + $0x28] sm:$0xff]  ;;  %v68_v17 = vld [vmem:[#allocation4 + $0xb0] sm:$0xff]  ;;  %v69_v18 = vld [vmem:[#allocation4 + $0xb8] sm:$0xff] }
  0x2b   :  { %212 = vmatprep.subr.bf16.mxu0 %v211_v8  ;;  %240 = vmatprep.subr.bf16.mxu1 %v211_v8  ;;  %v217_v19 = vpack.c.bf16 %v51_v16, %v50_v15  ;;  %v219_v20 = vpack.c.bf16 %v69_v18, %v68_v17  ;;  %v52_v21 = vld [vmem:[#allocation4 + $0x30] sm:$0xff]  ;;  %v53_v22 = vld [vmem:[#allocation4 + $0x38] sm:$0xff]  ;;  %v70_v23 = vld [vmem:[#allocation4 + $0xc0] sm:$0xff] }
  0x2c   :  { %v71_v24 = vld [vmem:[#allocation4 + $0xc8] sm:$0xff]  ;;  %v45_v26 = vld [vmem:[#allocation2 + $0x18] sm:$0xff]  ;;  %v221_v27 = vpack.c.bf16 %v53_v22, %v52_v21  ;;  %v54_v29 = vld [vmem:[#allocation4 + $0x40] sm:$0xff] }
  0x2d   :  { %v43_v25 = vld [vmem:[#allocation2 + $0x8] sm:$0xff]  ;;  %v223_v28 = vpack.c.bf16 %v71_v24, %v70_v23  ;;  %v72_v31 = vld [vmem:[#allocation4 + $0xd0] sm:$0xff]  ;;  %v73_v32 = vld [vmem:[#allocation4 + $0xd8] sm:$0xff]  ;;  %154 = vmatprep.mubr.f32.mxu1 %v45_v26 }
  0x2e   :  { %214 = vmatpush3.bf16.msra.mxu0 %v213_v13  ;;  %248 = vmatpush3.bf16.msra.mxu1 %v213_v13  ;;  %v55_v30 = vld [vmem:[#allocation4 + $0x48] sm:$0xff]  ;;  %v227_v34 = vpack.c.bf16 %v73_v32, %v72_v31  ;;  %v56_v35 = vld [vmem:[#allocation4 + $0x50] sm:$0xff]  ;;  %v57_v36 = vld [vmem:[#allocation4 + $0x58] sm:$0xff] }
  0x2f   :  { %216 = vmatprep.subr.bf16.mxu0 %v215_v14  ;;  %241 = vmatprep.subr.bf16.mxu1 %v215_v14  ;;  %v225_v33 = vpack.c.bf16 %v55_v30, %v54_v29  ;;  %v74_v37 = vld [vmem:[#allocation4 + $0xe0] sm:$0xff]  ;;  %v75_v38 = vld [vmem:[#allocation4 + $0xe8] sm:$0xff]  ;;  %v229_v39 = vpack.c.bf16 %v57_v36, %v56_v35  ;;  %v76_v43 = vld [vmem:[#allocation4 + $0xf0] sm:$0xff] }
  0x30   :  { %149 = vmatprep.mubr.f32.mxu0 %v43_v25  ;;  %v231_v40 = vpack.c.bf16 %v75_v38, %v74_v37  ;;  %v58_v41 = vld [vmem:[#allocation4 + $0x60] sm:$0xff]  ;;  %v59_v42 = vld [vmem:[#allocation4 + $0x68] sm:$0xff]  ;;  %v77_v44 = vld [vmem:[#allocation4 + $0xf8] sm:$0xff] }
  0x31   :  { %v233_v45 = vpack.c.bf16 %v59_v42, %v58_v41  ;;  %v235_v46 = vpack.c.bf16 %v77_v44, %v76_v43  ;;  %v60_v47 = vld [vmem:[#allocation4 + $0x70] sm:$0xff]  ;;  %v61_v48 = vld [vmem:[#allocation4 + $0x78] sm:$0xff]  ;;  %v42_v50 = vld [vmem:[#allocation2] sm:$0xff] }
  0x32   :  { %218 = vmatpush3.bf16.msra.mxu0 %v217_v19  ;;  %249 = vmatpush3.bf16.msra.mxu1 %v217_v19  ;;  %v237_v49 = vpack.c.bf16 %v61_v48, %v60_v47  ;;  %v44_v51 = vld [vmem:[#allocation2 + $0x10] sm:$0xff]  ;;  %v168_v54 = vld [vmem:[%s370_s2] ss:$0 sm:$0xff] }
  0x33   :  { %220 = vmatprep.subr.bf16.mxu0 %v219_v20  ;;  %242 = vmatprep.subr.bf16.mxu1 %v219_v20 }
  0x36   :  { %222 = vmatpush3.bf16.msra.mxu0 %v221_v27  ;;  %250 = vmatpush3.bf16.msra.mxu1 %v221_v27 }
  0x37   :  { %224 = vmatprep.subr.bf16.mxu0 %v223_v28  ;;  %243 = vmatprep.subr.bf16.mxu1 %v223_v28 }
  0x3a   :  { %226 = vmatpush3.bf16.msra.mxu0 %v225_v33  ;;  %251 = vmatpush3.bf16.msra.mxu1 %v225_v33 }
  0x3b   :  { %228 = vmatprep.subr.bf16.mxu0 %v227_v34  ;;  %244 = vmatprep.subr.bf16.mxu1 %v227_v34 }
  0x3e   :  { %230 = vmatpush3.bf16.msra.mxu0 %v229_v39  ;;  %252 = vmatpush3.bf16.msra.mxu1 %v229_v39 }
  0x3f   :  { %232 = vmatprep.subr.bf16.mxu0 %v231_v40  ;;  %245 = vmatprep.subr.bf16.mxu1 %v231_v40 }
  0x42   :  { %234 = vmatpush3.bf16.msra.mxu0 %v233_v45  ;;  %253 = vmatpush3.bf16.msra.mxu1 %v233_v45 }
  0x43   :  { %236 = vmatprep.subr.bf16.mxu0 %v235_v46  ;;  %246 = vmatprep.subr.bf16.mxu1 %v235_v46 }
  0x46   :  { %238 = vmatpush3.bf16.msra.mxu0 %v237_v49  ;;  %254 = vmatpush3.bf16.msra.mxu1 %v237_v49 }
  0x49   :  { %150 = vmatmul.mubr.f32.vlgmr.msra.gmra.mrb[0].mxu0 %v42_v50  ;;  %155 = vmatmul.mubr.f32.vlgmr.msra.gmra.mrb[0].mxu1 %v44_v51 }
 0x11c   :  { %v201_v52 = vpop.f32.mrb[0].mxu0  ;;  %v204_v53 = vpop.f32.mrb[0].mxu1 }
 0x11d   :  { %v202_v55 = vpop.f32.mrb[1].mxu0  ;;  %v205_v56 = vpop.f32.mrb[1].mxu1 }
 0x11e   :  { %v203_v57 = vadd.f32 %v202_v55, %v201_v52  ;;  %v206_v58 = vadd.f32 %v205_v56, %v204_v53 }
 0x120   :  { %v152_v59 = vadd.f32 %v203_v57, %v168_v54  ;;  %v157_v60 = vadd.f32 %v206_v58, %v168_v54 }
 0x122   :  { %160 = vst [vmem:[%s371_s3] sm:$0xff] %v152_v59  ;;  %161 = vst [vmem:[%s371_s3 + $0x8] sm:$0xff] %v157_v60 }
 0x123   :  { %166 = vsyncpa [#allocation3], 1 }
 0x124   :  { %167 = vsyncpa [#allocation5], 1 }

</bundles_post_ra>
